<compile_context>
chip_gen: v5e
topology: v5e:2x2
jax: 0.10.0
libtpu: 0.0.40
codegen_flags: <defaults>
</compile_context>

<pallas_src>
import jax
import jax.numpy as jnp
import numpy as np
from jax.experimental import pallas as pl
from jax.experimental.pallas import tpu as pltpu

# dtype for the HBM->VMEM transfer of the gathered embeddings. The kernel is
# HBM-bandwidth bound; bf16 transfer + f32 accumulation halves bytes moved.
# Flip to jnp.float32 for bit-exact parity with the f32 PyTorch module.
EMB_TRANSFER_DTYPE = jnp.bfloat16

LANE = 128
_MAX_B_TILE = 1024   # conservative across v5e/v6e (128 MiB) and v7x (64 MiB) VMEM


def _round_up(x, m):
    return ((x + m - 1) // m) * m


def _pick_b_tile(b_padded):
    for t in (_MAX_B_TILE, 512, 256, 128):
        if b_padded % t == 0:
            return t
    return LANE


def _fm_kernel(v_ref, w_ref, bias_ref, out_ref):
    # v_ref:    (F, K, Bt)  gathered embeddings, batch on lanes (bf16 or f32)
    # w_ref:    (F, Bt)     gathered per-field linear weights (f32)
    # bias_ref: (1,)        linear bias in SMEM
    # out_ref:  (1, Bt)     lane-dense sigmoid output (f32)
    v = v_ref[...].astype(jnp.float32)       # f32 accumulation regardless of transfer dtype
    w = w_ref[...]

    sum_v = jnp.sum(v, axis=0)               # (K, Bt)   sum over fields
    part1 = sum_v * sum_v                    # (K, Bt)
    part2 = jnp.sum(v * v, axis=0)           # (K, Bt)
    inter = 0.5 * jnp.sum(part1 - part2, axis=0, keepdims=True)   # (1, Bt) sublane reduce

    lin = jnp.sum(w, axis=0, keepdims=True) + bias_ref[0]         # (1, Bt)
    out_ref[...] = jax.nn.sigmoid(lin + inter)                    # (1, Bt)


def fm_forward(v_t, w_t, bias, *, b_tile=None):
    """v_t: (F, K, B), w_t: (F, B), bias: (1,) -> (B,) float32."""
    F, K, B = v_t.shape
    b_padded = _round_up(B, LANE)
    if b_tile is None:
        b_tile = _pick_b_tile(b_padded)
    if b_padded != B:
        pad = b_padded - B
        v_t = jnp.pad(v_t, ((0, 0), (0, 0), (0, pad)))
        w_t = jnp.pad(w_t, ((0, 0), (0, pad)))

    grid = (b_padded // b_tile,)
    out = pl.pallas_call(
        _fm_kernel,
        out_shape=jax.ShapeDtypeStruct((1, b_padded), jnp.float32),
        grid=grid,
        in_specs=[
            pl.BlockSpec((F, K, b_tile), lambda i: (0, 0, i)),              # v (VMEM)
            pl.BlockSpec((F, b_tile), lambda i: (0, i)),                    # w (VMEM)
            pl.BlockSpec(memory_space=pltpu.MemorySpace.SMEM),              # bias scalar
        ],
        out_specs=pl.BlockSpec((1, b_tile), lambda i: (0, i)),              # lane-dense out
        compiler_params=pltpu.CompilerParams(
            dimension_semantics=("parallel",),      # megacore / v7x dual-TC sharding
            vmem_limit_bytes=64 * 1024 * 1024,
        ),
    )(v_t, w_t, bias)
    return out[0, :B]


class FactorizationMachineModelPallas:
    """Deterministic, synthetic-parameter port of FactorizationMachineModel."""

    def __init__(self, field_dims, output_dim=16, key=jax.random.PRNGKey(0)):
        self.field_dims = tuple(int(d) for d in field_dims)
        self.num_fields = len(self.field_dims)
        self.output_dim = int(output_dim)
        total = sum(self.field_dims)
        # offsets for label-encoded lookup (np.cumsum trick in the layers)
        self.offsets = jnp.asarray(
            np.concatenate(([0], np.cumsum(self.field_dims)[:-1])), dtype=jnp.int32
        )
        k_emb, k_lin = jax.random.split(key)
        # FeaturesEmbedding: nn.Embedding(sum(field_dims), output_dim)
        self.emb_table = (
            jax.random.normal(k_emb, (total, output_dim), dtype=jnp.float32) * 0.1
        )
        # FeaturesLinear: nn.Embedding(sum(field_dims), 1) + bias
        self.lin_table = (
            jax.random.normal(k_lin, (total, 1), dtype=jnp.float32) * 0.1
        )
        self.lin_bias = jnp.zeros((1,), dtype=jnp.float32)
        # low-precision copy used for the HBM->VMEM transfer
        self.emb_table_lp = self.emb_table.astype(EMB_TRANSFER_DTYPE)

    def __call__(self, x):
        # x: (B, F) int32 indices, x[:, f] in [0, field_dims[f])
        idx = x.astype(jnp.int32) + self.offsets[None, :]              # (B, F)
        # TODO(synk): fuse these gathers into the kernel via scalar-prefetched
        # indices + DMA/in-kernel gather to halve HBM traffic.
        v = jnp.take(self.emb_table_lp, idx, axis=0)                   # (B, F, K) bf16
        w = jnp.take(self.lin_table, idx, axis=0)[..., 0]              # (B, F)   f32
        v_t = jnp.transpose(v, (1, 2, 0))                              # (F, K, B)
        w_t = jnp.transpose(w, (1, 0))                                 # (F, B)
        return fm_forward(v_t, w_t, self.lin_bias)                     # (B,)


def _reference(emb_table, lin_table, lin_bias, offsets, x):
    """Pure-JAX reference matching the PyTorch forward exactly (f32 math)."""
    idx = x.astype(jnp.int32) + offsets[None, :]
    v = jnp.take(emb_table, idx, axis=0).astype(jnp.float32)
    w = jnp.take(lin_table, idx, axis=0)[..., 0].astype(jnp.float32)
    part1 = jnp.sum(v, axis=1) ** 2
    part2 = jnp.sum(v ** 2, axis=1)
    inter = jnp.sum(part1 - part2, axis=1) * 0.5
    lin = jnp.sum(w, axis=1) + lin_bias[0]
    return jax.nn.sigmoid(lin + inter)


if __name__ == "__main__":
    key = jax.random.PRNGKey(0)
    field_dims = [5, 7, 3, 11]      # F = 4 fields, 26 total categories
    B, K = 256, 16                  # small batch; 2 grid steps of 128 lanes

    model = FactorizationMachineModelPallas(field_dims, output_dim=K, key=key)

    # deterministic integer feature indices, one per field
    idx_key = jax.random.fold_in(key, 1)
    cols = []
    for f, d in enumerate(field_dims):
        cols.append(
            jax.random.randint(jax.random.fold_in(idx_key, f), (B,), 0, d, dtype=jnp.int32)
        )
    x = jnp.stack(cols, axis=1)     # (B, F) int32

    out = jax.block_until_ready(model(x))
    assert out.shape == (B,)

    # tight check against a reference fed the same bf16-transferred embeddings
    ref_lp = _reference(model.emb_table_lp, model.lin_table, model.lin_bias,
                        model.offsets, x)
    np.testing.assert_allclose(np.asarray(out), np.asarray(ref_lp),
                               rtol=2e-5, atol=2e-5)

    # fidelity check against the full-f32 PyTorch-equivalent math
    ref_f32 = _reference(model.emb_table, model.lin_table, model.lin_bias,
                         model.offsets, x)
    np.testing.assert_allclose(np.asarray(out), np.asarray(ref_f32),
                               rtol=0, atol=1e-2)

    print("KERNEL_OK")
</pallas_src>

<mosaic_0001>
module attributes {stable_mosaic.version = 11 : i64} {
  func.func @_fm_kernel(%arg0: i32, %arg1: memref<4x16x256xbf16, #tpu.memory_space<vmem>>, %arg2: memref<4x256xf32, #tpu.memory_space<vmem>>, %arg3: memref<1xf32, #tpu.memory_space<smem>>, %arg4: memref<1x256xf32, #tpu.memory_space<vmem>>) attributes {dimension_semantics = [#tpu.dimension_semantics<parallel>], iteration_bounds = array<i64: 1>, scalar_prefetch = 0 : i64, scratch_operands = 0 : i64, tpu.core_type = #tpu.core_type<tc>, window_params = [{transform_indices = @transform_0, window_bounds = array<i64: 4, 16, 256>}, {transform_indices = @transform_1, window_bounds = array<i64: 4, 256>}, {transform_indices = @transform_2, window_bounds = array<i64: 1>}, {transform_indices = @transform_3, window_bounds = array<i64: 1, 256>}]} {
    %c0 = arith.constant 0 : index
    %c0_0 = arith.constant 0 : index
    %c0_1 = arith.constant 0 : index
    %0 = vector.load %arg1[%c0, %c0_0, %c0_1] : memref<4x16x256xbf16, #tpu.memory_space<vmem>>, vector<4x16x256xbf16>
    %1 = arith.extf %0 : vector<4x16x256xbf16> to vector<4x16x256xf32>
    %c0_2 = arith.constant 0 : index
    %c0_3 = arith.constant 0 : index
    %2 = vector.load %arg2[%c0_2, %c0_3] : memref<4x256xf32, #tpu.memory_space<vmem>>, vector<4x256xf32>
    %cst = arith.constant dense<0.000000e+00> : vector<16x256xf32>
    %3 = vector.multi_reduction <add>, %1, %cst [0] : vector<4x16x256xf32> to vector<16x256xf32>
    %4 = arith.mulf %3, %3 : vector<16x256xf32>
    %5 = arith.mulf %1, %1 : vector<4x16x256xf32>
    %cst_4 = arith.constant dense<0.000000e+00> : vector<16x256xf32>
    %6 = vector.multi_reduction <add>, %5, %cst_4 [0] : vector<4x16x256xf32> to vector<16x256xf32>
    %7 = arith.subf %4, %6 : vector<16x256xf32>
    %cst_5 = arith.constant dense<0.000000e+00> : vector<256xf32>
    %8 = vector.multi_reduction <add>, %7, %cst_5 [0] : vector<16x256xf32> to vector<256xf32>
    %9 = vector.shape_cast %8 : vector<256xf32> to vector<1x256xf32>
    %cst_6 = arith.constant 5.000000e-01 : f32
    %10 = vector.broadcast %cst_6 : f32 to vector<1x256xf32>
    %11 = arith.mulf %10, %9 : vector<1x256xf32>
    %cst_7 = arith.constant dense<0.000000e+00> : vector<256xf32>
    %12 = vector.multi_reduction <add>, %2, %cst_7 [0] : vector<4x256xf32> to vector<256xf32>
    %13 = vector.shape_cast %12 : vector<256xf32> to vector<1x256xf32>
    %c0_8 = arith.constant 0 : index
    %14 = memref.load %arg3[%c0_8] : memref<1xf32, #tpu.memory_space<smem>>
    %15 = vector.broadcast %14 : f32 to vector<1x256xf32>
    %16 = arith.addf %13, %15 : vector<1x256xf32>
    %17 = arith.addf %16, %11 : vector<1x256xf32>
    %18 = arith.negf %17 : vector<1x256xf32>
    %19 = math.exp %18 : vector<1x256xf32>
    %cst_9 = arith.constant 1.000000e+00 : f32
    %20 = vector.broadcast %cst_9 : f32 to vector<1x256xf32>
    %21 = arith.addf %20, %19 : vector<1x256xf32>
    %22 = arith.divf %20, %21 : vector<1x256xf32>
    %c0_10 = arith.constant 0 : index
    %c0_11 = arith.constant 0 : index
    %23 = vector.load %arg4[%c0_10, %c0_11] : memref<1x256xf32, #tpu.memory_space<vmem>>, vector<1x256xf32>
    tpu.vector_store %arg4[%c0_10, %c0_11], %22 {strides = array<i32>} : memref<1x256xf32, #tpu.memory_space<vmem>>, vector<1x256xf32>,
    return
  }
  func.func @transform_0(%arg0: i32) -> (i32, i32, i32) {
    %c0_i32 = arith.constant 0 : i32
    %c0_i32_0 = arith.constant 0 : i32
    %c0_i32_1 = arith.constant 0 : i32
    return %c0_i32, %c0_i32_0, %arg0 : i32, i32, i32
  }
  func.func @transform_1(%arg0: i32) -> (i32, i32) {
    %c0_i32 = arith.constant 0 : i32
    %c0_i32_0 = arith.constant 0 : i32
    return %c0_i32, %arg0 : i32, i32
  }
  func.func @transform_2(%arg0: i32) -> i32 {
    %c0_i32 = arith.constant 0 : i32
    %c0_i32_0 = arith.constant 0 : i32
    return %c0_i32 : i32
  }
  func.func @transform_3(%arg0: i32) -> (i32, i32) {
    %c0_i32 = arith.constant 0 : i32
    %c0_i32_0 = arith.constant 0 : i32
    return %c0_i32, %arg0 : i32, i32
  }
}

</mosaic_0001>

<bundles_post_ra>
// kernel: tpu_custom_call.1
= control target key start
LH: loop header
LB: loop body
LE: loop exit
PB: predicated region body
PF: predicated region fallthrough
CT: control target
= control target key end

     0   :  { %9 = vsyncpa [#allocation4], 0  ;;  %s367_s0 = inlined_call_operand.hbm [shape: bf16[4,16,256], index: 0, kind: input, shape index: {}]   ;;  %s368_s1 = inlined_call_operand.hbm [shape: f32[4,256], index: 1, kind: input, shape index: {}]   ;;  %s369_s2 = inlined_call_operand.<no memory space> [shape: f32[1], index: 2, kind: input, shape index: {}]   ;;  %s370_s3 = inlined_call_operand.hbm [shape: f32[1,256], index: 3, kind: output, shape index: {}]  }
   0x1   :  { %10 = vsyncpa [#allocation7], 0 }
   0x2   :  { %11 = vsyncpa [#allocation5], 0  ;;  %s16_s14 = sshll.u32 %s367_s0, 4  ;;  %s322_s15 = smov [#allocation3]   ;;  %s17_s14 = int_to_ptr.hbm [resolvable:$true] %s16_s14 }
   0x3   :  { %s18_s16 = sshll.u32 %s322_s15, 4  ;;  %s30_s19 = sshll.u32 %s368_s1, 4  ;;  %s19_s16 = int_to_ptr.vmem [resolvable:$true] %s18_s16  ;;  %s31_s19 = int_to_ptr.hbm [resolvable:$true] %s30_s19 }
   0x4   :  { %s323_s20 = smov 128   ;;  %s324_s21 = smov 8  }
   0x5   :  { %24 = dma.hbm_to_vmem [thread:$0]  %s17_s14, 1024, %s19_s16, [#allocation4], %s323_s20, %s323_s20, %s324_s21  }
   0x6   :  { %s325_s22 = smov [#allocation6]  }
   0x7   :  { %s32_s23 = sshll.u32 %s325_s22, 4  ;;  %s33_s23 = int_to_ptr.vmem [resolvable:$true] %s32_s23 }
   0x8   :  { %35 = dma.hbm_to_vmem [thread:$0]  %s31_s19, 128, %s33_s23, [#allocation7]  }
   0x9   :  { %316 = dma.done.wait [#allocation4], 1024  }
   0xa   :  { %317 = vsyncadd [#allocation4], 4294966272 }
   0xb   :  { %318 = dma.done.wait [#allocation7], 128  }
   0xc   :  { %319 = vsyncadd [#allocation7], 4294967168  ;;  %v70_v0 = vld [vmem:[#allocation6] sm:$0xff]  ;;  %v47_v2 = vld [vmem:[#allocation3 + $0x8] sm:$0xff]  ;;  %vm141_vm0 = vcmask 1043456   ;;  %s218_s27 = sshll.u32 %s370_s3, 4  ;;  %s219_s27 = int_to_ptr.hbm [resolvable:$true] %s218_s27 }
   0xd   :  { %v46_v1 = vld [vmem:[#allocation3] sm:$0xff]  ;;  %136 = vst [vmem:[#allocation1] ss:$2 sm:$0xff] %v70_v0  ;;  %v48_v3 = vld [vmem:[#allocation3 + $0x10] sm:$0xff]  ;;  %v49_v4 = vld [vmem:[#allocation3 + $0x18] sm:$0xff]  ;;  %v56_v8 = vunpack.c.l.bf16 %v47_v2  ;;  %v57_v9 = vunpack.c.h.bf16 %v47_v2  ;;  %vm203_vm8 = vcmask 1040384  }
   0xe   :  { %v50_v5 = vld [vmem:[#allocation3 + $0x20] sm:$0xff]  ;;  %v54_v6 = vunpack.c.l.bf16 %v46_v1  ;;  %v55_v7 = vunpack.c.h.bf16 %v46_v1  ;;  %v51_v10 = vld [vmem:[#allocation3 + $0x28] sm:$0xff]  ;;  %v52_v11 = vld [vmem:[#allocation3 + $0x30] sm:$0xff]  ;;  %v58_v12 = vunpack.c.l.bf16 %v48_v3  ;;  %v59_v13 = vunpack.c.h.bf16 %v48_v3 }
   0xf   :  { %v60_v14 = vunpack.c.l.bf16 %v49_v4  ;;  %v61_v15 = vunpack.c.h.bf16 %v49_v4  ;;  %v53_v16 = vld [vmem:[#allocation3 + $0x38] sm:$0xff]  ;;  %v62_v17 = vunpack.c.l.bf16 %v50_v5  ;;  %v63_v18 = vunpack.c.h.bf16 %v50_v5 }
  0x10   :  { %v64_v19 = vunpack.c.l.bf16 %v51_v10  ;;  %v65_v20 = vunpack.c.h.bf16 %v51_v10  ;;  %v66_v21 = vunpack.c.l.bf16 %v52_v11  ;;  %v67_v22 = vunpack.c.h.bf16 %v52_v11 }
  0x11   :  { %v71_v23 = vadd.f32 %v58_v12, %v54_v6  ;;  %v74_v24 = vadd.f32 %v59_v13, %v55_v7  ;;  %v77_v25 = vadd.f32 %v60_v14, %v56_v8  ;;  %v80_v26 = vadd.f32 %v61_v15, %v57_v9 }
  0x12   :  { %v68_v27 = vunpack.c.l.bf16 %v53_v16  ;;  %v69_v28 = vunpack.c.h.bf16 %v53_v16  ;;  %v87_v29 = vmul.f32 %v54_v6, %v54_v6  ;;  %v88_v30 = vmul.f32 %v55_v7, %v55_v7 }
  0x13   :  { %v72_v31 = vadd.f32 %v71_v23, %v62_v17  ;;  %v75_v32 = vadd.f32 %v74_v24, %v63_v18  ;;  %v78_v33 = vadd.f32 %v77_v25, %v64_v19  ;;  %v81_v34 = vadd.f32 %v80_v26, %v65_v20 }
  0x14   :  { %v89_v35 = vmul.f32 %v56_v8, %v56_v8  ;;  %v90_v36 = vmul.f32 %v57_v9, %v57_v9  ;;  %v91_v37 = vmul.f32 %v58_v12, %v58_v12  ;;  %v92_v38 = vmul.f32 %v59_v13, %v59_v13  ;;  %v137_v47 = vld.sshfl [vmem:[#allocation1] sm:$0xff pattern:$0x75316420]  ;;  %v138_v48 = vld.sshfl [vmem:[#allocation1 + $0x8] sm:$0xff pattern:$0x75316420] }
  0x15   :  { %v73_v39 = vadd.f32 %v72_v31, %v66_v21  ;;  %v76_v40 = vadd.f32 %v75_v32, %v67_v22  ;;  %v93_v41 = vmul.f32 %v60_v14, %v60_v14  ;;  %v94_v42 = vmul.f32 %v61_v15, %v61_v15 }
  0x16   :  { %v79_v43 = vadd.f32 %v78_v33, %v68_v27  ;;  %v82_v44 = vadd.f32 %v81_v34, %v69_v28  ;;  %v95_v45 = vmul.f32 %v62_v17, %v62_v17  ;;  %v96_v46 = vmul.f32 %v63_v18, %v63_v18 }
  0x17   :  { %v83_v49 = vmul.f32 %v73_v39, %v73_v39  ;;  %v84_v50 = vmul.f32 %v76_v40, %v76_v40  ;;  %v97_v51 = vmul.f32 %v64_v19, %v64_v19  ;;  %v98_v52 = vmul.f32 %v65_v20, %v65_v20 }
  0x18   :  { %v99_v53 = vmul.f32 %v66_v21, %v66_v21  ;;  %v100_v54 = vmul.f32 %v67_v22, %v67_v22  ;;  %v101_v55 = vmul.f32 %v68_v27, %v68_v27  ;;  %v102_v56 = vmul.f32 %v69_v28, %v69_v28 }
  0x19   :  { %v103_v57 = vadd.f32 %v91_v37, %v87_v29  ;;  %v106_v58 = vadd.f32 %v92_v38, %v88_v30  ;;  %v109_v59 = vadd.f32 %v93_v41, %v89_v35  ;;  %v112_v60 = vadd.f32 %v94_v42, %v90_v36 }
  0x1a   :  { %v85_v61 = vmul.f32 %v79_v43, %v79_v43  ;;  %v86_v62 = vmul.f32 %v82_v44, %v82_v44  ;;  %v142_v63 = vsel %vm141_vm0, %v137_v47, 0.0  ;;  %v149_v0 = vsel %vm141_vm0, %v138_v48, 0.0 }
  0x1b   :  { %v104_v1 = vadd.f32 %v103_v57, %v95_v45  ;;  %v107_v2 = vadd.f32 %v106_v58, %v96_v46  ;;  %v110_v3 = vadd.f32 %v109_v59, %v97_v51  ;;  %v113_v4 = vadd.f32 %v112_v60, %v98_v52 }
  0x1c   :  { %v143_v5 = vrot.slane %v142_v63, 4  ;;  %v150_v6 = vrot.slane %v149_v0, 4  ;;  %v157_v37 = vstv %s369_s2  ;;  %s326_s2 = smov [#allocation8]  }
  0x1d   :  { %v105_v7 = vadd.f32 %v104_v1, %v99_v53  ;;  %v108_v8 = vadd.f32 %v107_v2, %v100_v54  ;;  %v111_v9 = vadd.f32 %v110_v3, %v101_v55  ;;  %v114_v10 = vadd.f32 %v113_v4, %v102_v56  ;;  %s216_s24 = sshll.u32 %s326_s2, 4  ;;  %s217_s24 = int_to_ptr.vmem [resolvable:$true] %s216_s24 }
  0x1e   :  { %v144_v11 = vadd.f32 %v143_v5, %v142_v63  ;;  %v151_v12 = vadd.f32 %v150_v6, %v149_v0  ;;  %v206_v3 = vlaneseq }
  0x1f   :  { %v115_v13 = vsub.f32 %v83_v49, %v105_v7  ;;  %v116_v14 = vsub.f32 %v84_v50, %v108_v8  ;;  %v117_v15 = vsub.f32 %v85_v61, %v111_v9  ;;  %v118_v16 = vsub.f32 %v86_v62, %v114_v10 }
  0x20   :  { %v145_v17 = vrot.slane %v144_v11, 2  ;;  %v152_v18 = vrot.slane %v151_v12, 2  ;;  %vm208_vm10 = vcmp.lt.s32.totalorder %v206_v3, 256 }
  0x21   :  { %v119_v19 = vadd.f32 %v117_v15, %v115_v13  ;;  %v126_v20 = vadd.f32 %v118_v16, %v116_v14 }
  0x22   :  { %v146_v23 = vadd.f32 %v145_v17, %v144_v11  ;;  %v153_v24 = vadd.f32 %v152_v18, %v151_v12 }
  0x23   :  { %v120_v21 = vrot.slane %v119_v19, 4  ;;  %v127_v22 = vrot.slane %v126_v20, 4 }
  0x24   :  { %v147_v29 = vrot.slane %v146_v23, 1  ;;  %v154_v30 = vrot.slane %v153_v24, 1 }
  0x25   :  { %v121_v25 = vadd.f32 %v120_v21, %v119_v19  ;;  %v128_v26 = vadd.f32 %v127_v22, %v126_v20 }
  0x26   :  { %v148_v35 = vadd.f32 %v147_v29, %v146_v23  ;;  %v155_v36 = vadd.f32 %v154_v30, %v153_v24 }
  0x27   :  { %v122_v27 = vrot.slane %v121_v25, 2  ;;  %v129_v28 = vrot.slane %v128_v26, 2 }
  0x28   :  { %v158_v42 = vadd.f32 %v157_v37, %v148_v35  ;;  %v159_v43 = vadd.f32 %v157_v37, %v155_v36 }
  0x29   :  { %v123_v31 = vadd.f32 %v122_v27, %v121_v25  ;;  %v130_v32 = vadd.f32 %v129_v28, %v128_v26 }
  0x2b   :  { %v124_v33 = vrot.slane %v123_v31, 1  ;;  %v131_v34 = vrot.slane %v130_v32, 1 }
  0x2d   :  { %v125_v38 = vadd.f32 %v124_v33, %v123_v31  ;;  %v132_v39 = vadd.f32 %v131_v34, %v130_v32 }
  0x2f   :  { %v133_v40 = vmul.f32 0.5, %v125_v38  ;;  %v134_v41 = vmul.f32 0.5, %v132_v39 }
  0x31   :  { %v160_v44 = vadd.f32 %v158_v42, %v133_v40  ;;  %v161_v45 = vadd.f32 %v159_v43, %v134_v41 }
  0x33   :  { %v229_v46 = vmul.f32 -1.442695, %v160_v44  ;;  %v230_v47 = vmul.f32 -1.442695, %v161_v45 }
  0x35   :  { %236 = vpow2.f32 %v229_v46 }
  0x36   :  { %238 = vpow2.f32 %v230_v47 }
  0x3b   :  { %v237_v48 = vpop.eup %236 }
  0x3c   :  { %v239_v49 = vpop.eup %238  ;;  %v168_v50 = vadd.f32 1.0, %v237_v48 }
  0x3d   :  { %v169_v51 = vadd.f32 1.0, %v239_v49 }
  0x3e   :  { %240 = vrcp.f32 %v168_v50  ;;  %vm175_vm3 = vweird.f32 %v168_v50  ;;  %v181_v63 = vand.u32 2147483648, %v168_v50  ;;  %v179_v1 = vand.u32 2147483647, %v168_v50 }
  0x3f   :  { %242 = vrcp.f32 %v169_v51  ;;  %v196_v59 = vand.u32 2147483648, %v169_v51  ;;  %v194_v61 = vand.u32 2147483647, %v169_v51  ;;  %vm190_vm5 = vweird.f32 %v169_v51 }
  0x40   :  { %v182_v7 = vor.u32 1.1754944e-38, %v181_v63  ;;  %vm180_vm9 = vcmp.eq.f32.partialorder %v179_v1, 8.507059e+37 }
  0x41   :  { %v197_v4 = vor.u32 1.1754944e-38, %v196_v59  ;;  %vm195_vm7 = vcmp.eq.f32.partialorder %v194_v61, 8.507059e+37 }
  0x44   :  { %v241_v52 = vpop.eup %240 }
  0x45   :  { %v243_v53 = vpop.eup %242  ;;  %v171_v54 = vmul.f32 %v241_v52, %v168_v50  ;;  %vm176_vm1 = vweird.f32 %v241_v52 }
  0x46   :  { %v186_v55 = vmul.f32 %v243_v53, %v169_v51  ;;  %vm191_vm2 = vweird.f32 %v243_v53  ;;  %vm358_vm4 = vmor %vm175_vm3, %vm176_vm1 }
  0x47   :  { %v172_v56 = vsub.f32 1.0, %v171_v54  ;;  %vm192_vm6 = vmor %vm190_vm5, %vm191_vm2 }
  0x48   :  { %v187_v57 = vsub.f32 1.0, %v186_v55 }
  0x49   :  { %v173_v58 = vmul.f32 %v241_v52, %v172_v56 }
  0x4a   :  { %v188_v60 = vmul.f32 %v243_v53, %v187_v57 }
  0x4b   :  { %v174_v62 = vadd.f32 %v241_v52, %v173_v58 }
  0x4c   :  { %v189_v2 = vadd.f32 %v243_v53, %v188_v60 }
  0x4d   :  { %v178_v5 = vsel %vm358_vm4, %v241_v52, %v174_v62 }
  0x4e   :  { %v193_v6 = vsel %vm192_vm6, %v243_v53, %v189_v2  ;;  %v183_v10 = vsel %vm180_vm9, %v182_v7, %v178_v5 }
  0x4f   :  { %v198_v8 = vsel %vm195_vm7, %v197_v4, %v193_v6 }
  0x50   :  { %v202_v9 = vrot.slane %v198_v8, 7 }
  0x52   :  { %v204_v11 = vsel %vm203_vm8, %v183_v10, %v202_v9 }
  0x53   :  { %210 = vst.msk [vmem:[#allocation8] sm:$0x3] %vm208_vm10, %v204_v11 }
  0x54   :  { %221 = dma.vmem_to_hbm [thread:$0]  %s217_s24, 32, %s219_s27, [#allocation5]  }
  0x55   :  { %320 = dma.done.wait [#allocation5], 32  }
  0x56   :  { %321 = vsyncadd [#allocation5], 4294967264 }
  0x57   :  { %226 = vsyncpa [#allocation4], 1 }
  0x58   :  { %227 = vsyncpa [#allocation7], 1 }
  0x59   :  { %228 = vsyncpa [#allocation5], 1 }

</bundles_post_ra>
